<compile_context>
chip_gen: v7x
topology: tpu7x:2x2x1
jax: 0.10.0
libtpu: 0.0.40
codegen_flags: <defaults>
</compile_context>

<pallas_src>
import functools
import math

import jax
import jax.numpy as jnp
from jax import lax
from jax.experimental import pallas as pl
from jax.experimental.pallas import tpu as pltpu


# ---------------------------------------------------------------------------
# Tiling helpers
# ---------------------------------------------------------------------------
def _round_up(x, m):
    return ((x + m - 1) // m) * m


def _choose_tile(dim, target, grain=128):
    """Return (tile, padded_dim).

    Full dim when small; otherwise the largest power-of-two divisor of dim in
    [grain, target]; otherwise cap the block at `target` and pad dim up to a
    multiple of it (avoids giant full-dim blocks blowing scoped VMEM)."""
    if dim <= target:
        return dim, dim
    t = target
    while t >= grain:
        if dim % t == 0:
            return t, dim
        t //= 2
    return target, _round_up(dim, target)


# ---------------------------------------------------------------------------
# Kernel 1: tiled dense layer  o = x @ w + b
#   bf16 MXU operands (x cast in-kernel), f32 accumulation in VMEM scratch.
# ---------------------------------------------------------------------------
def _linear_kernel(x_ref, w_ref, b_ref, o_ref, acc_ref):
    @pl.when(pl.program_id(2) == 0)
    def _():
        acc_ref[...] = jnp.zeros_like(acc_ref)

    acc_ref[...] += jnp.dot(x_ref[...].astype(jnp.bfloat16), w_ref[...],
                            preferred_element_type=jnp.float32)

    @pl.when(pl.program_id(2) == pl.num_programs(2) - 1)
    def _():
        o_ref[...] = (acc_ref[...] + b_ref[...]).astype(o_ref.dtype)


def linear(x, w, b, out_dtype=jnp.float32, tm=512, tn=512, tk=1024):
    """x: (M, K) float, w: (K, N) bf16, b: (N,) f32 -> (M, N) in out_dtype."""
    M, K = x.shape
    K2, N = w.shape
    assert K == K2 and b.shape == (N,)

    tm, Mp = _choose_tile(M, tm)
    tn, Np = _choose_tile(N, tn)
    tk, Kp = _choose_tile(K, tk)

    if (Mp, Kp) != (M, K):
        x = jnp.pad(x, ((0, Mp - M), (0, Kp - K)))
    if (Kp, Np) != (K, N):
        w = jnp.pad(w, ((0, Kp - K), (0, Np - N)))
    if Np != N:
        b = jnp.pad(b, (0, Np - N))
    b2 = b.astype(jnp.float32).reshape(1, Np)

    grid = (Mp // tm, Np // tn, Kp // tk)
    flops = 2 * Mp * Np * Kp
    bytes_accessed = (Mp * Kp * x.dtype.itemsize
                      + Kp * Np * w.dtype.itemsize
                      + Mp * Np * jnp.dtype(out_dtype).itemsize)

    out = pl.pallas_call(
        _linear_kernel,
        out_shape=jax.ShapeDtypeStruct((Mp, Np), out_dtype),
        grid=grid,
        in_specs=[
            pl.BlockSpec((tm, tk), lambda i, j, k: (i, k)),
            pl.BlockSpec((tk, tn), lambda i, j, k: (k, j)),
            pl.BlockSpec((1, tn), lambda i, j, k: (0, j)),
        ],
        out_specs=pl.BlockSpec((tm, tn), lambda i, j, k: (i, j)),
        scratch_shapes=[pltpu.VMEM((tm, tn), jnp.float32)],
        compiler_params=pltpu.CompilerParams(
            dimension_semantics=("parallel", "parallel", "arbitrary"),
            vmem_limit_bytes=32 * 1024 * 1024),
        cost_estimate=pl.CostEstimate(flops=flops, transcendentals=0,
                                      bytes_accessed=bytes_accessed),
    )(x, w, b2)

    if (Mp, Np) != (M, N):
        out = out[:M, :N]
    return out


# ---------------------------------------------------------------------------
# Kernel 2: reprogramming attention over row tiles of the flattened token axis.
#   K/V have constant block indices -> stay resident in VMEM across the grid.
#   Per-head results are concatenated in-register and stored with a single
#   full-width (tq, H*E) store.  1/sqrt(E) is pre-folded into the Q weights.
# ---------------------------------------------------------------------------
def _reprog_attn_kernel(q_ref, k_ref, v_ref, o_ref, *, n_heads):
    HE = q_ref.shape[-1]
    E = HE // n_heads
    q = q_ref[...]            # (tq, HE) bf16
    k = k_ref[...]            # (S, HE)  bf16
    v = v_ref[...]            # (S, HE)  bf16

    outs = []
    for h in range(n_heads):  # H is small & static -> fully unrolled
        lo = h * E
        q_h = q[:, lo:lo + E]
        k_h = k[:, lo:lo + E]
        v_h = v[:, lo:lo + E]
        # scores = q_h @ k_h^T (contract E), f32 accumulation on the MXU.
        s = lax.dot_general(q_h, k_h, (((1,), (1,)), ((), ())),
                            preferred_element_type=jnp.float32)
        m = jnp.max(s, axis=-1, keepdims=True)
        p = jnp.exp(s - m)
        a = p * pl.reciprocal(jnp.sum(p, axis=-1, keepdims=True), approx=True)
        outs.append(jnp.dot(a.astype(v_h.dtype), v_h,
                            preferred_element_type=jnp.float32))
    # One full-lane-width store instead of n_heads masked narrow stores.
    o_ref[...] = jnp.concatenate(outs, axis=-1).astype(o_ref.dtype)


def reprogramming_attention(q, k, v, n_heads, tq=256):
    """q: (B, L, H*E) bf16, k/v: (S, H*E) bf16 -> (B, L, H*E) bf16."""
    B, L, HE = q.shape
    S, HEk = k.shape
    assert HEk == HE and v.shape == (S, HE) and HE % n_heads == 0

    M = B * L
    q2 = q.reshape(M, HE)
    tq, Mp = _choose_tile(M, tq)
    if Mp != M:
        q2 = jnp.pad(q2, ((0, Mp - M), (0, 0)))

    kernel = functools.partial(_reprog_attn_kernel, n_heads=n_heads)
    out = pl.pallas_call(
        kernel,
        out_shape=jax.ShapeDtypeStruct((Mp, HE), jnp.bfloat16),
        grid=(Mp // tq,),
        in_specs=[
            pl.BlockSpec((tq, HE), lambda i: (i, 0)),
            pl.BlockSpec((S, HE), lambda i: (0, 0)),   # constant -> K resident
            pl.BlockSpec((S, HE), lambda i: (0, 0)),   # constant -> V resident
        ],
        out_specs=pl.BlockSpec((tq, HE), lambda i: (i, 0)),
        compiler_params=pltpu.CompilerParams(
            dimension_semantics=("parallel",)),
    )(q2, k, v)

    if Mp != M:
        out = out[:M]
    return out.reshape(B, L, HE)


# ---------------------------------------------------------------------------
# Module wrapper
# ---------------------------------------------------------------------------
def reprogramming_layer_init(key, d_model, n_heads, d_llm, d_keys=None):
    """PyTorch nn.Linear-style init (U(-1/sqrt(fan_in), 1/sqrt(fan_in)))."""
    d_keys = d_keys or d_model // n_heads
    dk = d_keys * n_heads
    ks = jax.random.split(key, 8)

    def uniform(k, shape, fan_in):
        bound = 1.0 / math.sqrt(fan_in)
        return jax.random.uniform(k, shape, jnp.float32, -bound, bound)

    raw = dict(
        wq=uniform(ks[0], (d_model, dk), d_model), bq=uniform(ks[1], (dk,), d_model),
        wk=uniform(ks[2], (d_llm, dk), d_llm),     bk=uniform(ks[3], (dk,), d_llm),
        wv=uniform(ks[4], (d_llm, dk), d_llm),     bv=uniform(ks[5], (dk,), d_llm),
        wo=uniform(ks[6], (dk, d_llm), dk),        bo=uniform(ks[7], (d_llm,), dk),
    )
    return raw, d_keys


def prepare_params(raw, n_heads):
    """One-time host-side prep: fold 1/sqrt(E) into wq/bq, cast weights to
    persistent bf16 MXU operands, and fuse the K/V projection weights."""
    dk = raw["wq"].shape[1]
    E = dk // n_heads
    scale = 1.0 / math.sqrt(E)
    return dict(
        n_heads=n_heads, dk=dk,
        wq=(raw["wq"] * scale).astype(jnp.bfloat16),
        bq=(raw["bq"] * scale).astype(jnp.float32),
        wk=raw["wk"].astype(jnp.bfloat16), bk=raw["bk"].astype(jnp.float32),
        wv=raw["wv"].astype(jnp.bfloat16), bv=raw["bv"].astype(jnp.float32),
        wkv=jnp.concatenate([raw["wk"], raw["wv"]], axis=1).astype(jnp.bfloat16),
        bkv=jnp.concatenate([raw["bk"], raw["bv"]]).astype(jnp.float32),
        wo=raw["wo"].astype(jnp.bfloat16), bo=raw["bo"].astype(jnp.float32),
    )


def reprogramming_layer_forward(params, target_embedding, source_embedding,
                                value_embedding=None):
    """value_embedding=None (or the same array as source_embedding) selects the
    fused K/V projection path (the usual Time-LLM usage)."""
    B, L, d_model = target_embedding.shape
    S, d_llm = source_embedding.shape
    H = params["n_heads"]
    dk = params["dk"]

    # Q projection (scale pre-folded); activation cast to bf16 in-kernel.
    q = linear(target_embedding.reshape(B * L, d_model),
               params["wq"], params["bq"], out_dtype=jnp.bfloat16)   # (B*L, dk)

    fused = value_embedding is None or value_embedding is source_embedding
    if fused:
        kv = linear(source_embedding, params["wkv"], params["bkv"],
                    out_dtype=jnp.bfloat16)                          # (S, 2*dk)
        k, v = kv[:, :dk], kv[:, dk:]
    else:
        k = linear(source_embedding, params["wk"], params["bk"],
                   out_dtype=jnp.bfloat16)                           # (S, dk)
        v = linear(value_embedding, params["wv"], params["bv"],
                   out_dtype=jnp.bfloat16)                           # (S, dk)

    out = reprogramming_attention(q.reshape(B, L, dk), k, v, H)      # (B, L, dk)

    out = linear(out.reshape(B * L, dk), params["wo"], params["bo"],
                 out_dtype=jnp.float32)                              # (B*L, d_llm)
    return out.reshape(B, L, d_llm)


# ---------------------------------------------------------------------------
# Pure-JAX reference (same prepared bf16 weights / folded scale).
# ---------------------------------------------------------------------------
def reference_forward(params, target_embedding, source_embedding, value_embedding):
    B, L, d_model = target_embedding.shape
    S, d_llm = source_embedding.shape
    H = params["n_heads"]
    dk = params["dk"]
    E = dk // H
    bf = jnp.bfloat16

    def lin(x, w, b):
        return jnp.dot(x.astype(bf), w, preferred_element_type=jnp.float32) + b

    q = lin(target_embedding.reshape(B * L, d_model),
            params["wq"], params["bq"]).astype(bf)
    k = lin(source_embedding, params["wk"], params["bk"]).astype(bf)
    v = lin(value_embedding, params["wv"], params["bv"]).astype(bf)
    q = q.reshape(B, L, H, E)
    k = k.reshape(S, H, E)
    v = v.reshape(S, H, E)
    scores = jnp.einsum("blhe,she->bhls", q, k,
                        preferred_element_type=jnp.float32)   # scale already folded
    A = jax.nn.softmax(scores, axis=-1)
    out = jnp.einsum("bhls,she->blhe", A.astype(bf), v,
                     preferred_element_type=jnp.float32)
    out = out.astype(bf).reshape(B * L, dk)
    out = lin(out, params["wo"], params["bo"])
    return out.reshape(B, L, d_llm)


if __name__ == "__main__":
    # Small shapes consistent with the module's forward.
    B, L, S = 2, 8, 8
    d_model, n_heads, d_llm = 32, 4, 32

    key = jax.random.PRNGKey(0)
    kp, kt, ks, kv = jax.random.split(key, 4)
    raw, d_keys = reprogramming_layer_init(kp, d_model, n_heads, d_llm)
    params = prepare_params(raw, n_heads)

    target_embedding = jax.random.normal(kt, (B, L, d_model), jnp.float32)
    source_embedding = jax.random.normal(ks, (S, d_llm), jnp.float32)
    value_embedding = jax.random.normal(kv, (S, d_llm), jnp.float32)

    # Fused K/V path (value == source, the usual Time-LLM usage).
    out_fused = reprogramming_layer_forward(params, target_embedding,
                                            source_embedding)
    out_fused = jax.block_until_ready(out_fused)
    ref_fused = reference_forward(params, target_embedding, source_embedding,
                                  source_embedding)
    assert out_fused.shape == (B, L, d_llm) and out_fused.dtype == jnp.float32
    assert jnp.allclose(out_fused, ref_fused, atol=2e-2, rtol=2e-2), \
        "fused path mismatch vs JAX reference"

    # Separate source/value path (general module signature).
    out_sep = reprogramming_layer_forward(params, target_embedding,
                                          source_embedding, value_embedding)
    out_sep = jax.block_until_ready(out_sep)
    ref_sep = reference_forward(params, target_embedding, source_embedding,
                                value_embedding)
    assert jnp.allclose(out_sep, ref_sep, atol=2e-2, rtol=2e-2), \
        "separate path mismatch vs JAX reference"

    print("KERNEL_OK")
</pallas_src>

<mosaic_0001>
module attributes {stable_mosaic.version = 11 : i64} {
  func.func @_linear_kernel(%arg0: i32, %arg1: i32, %arg2: i32, %arg3: memref<16x32xf32, #tpu.memory_space<vmem>>, %arg4: memref<32x32xbf16, #tpu.memory_space<vmem>>, %arg5: memref<1x32xf32, #tpu.memory_space<vmem>>, %arg6: memref<16x32xbf16, #tpu.memory_space<vmem>>, %arg7: memref<16x32xf32, #tpu.memory_space<vmem>>) attributes {dimension_semantics = [#tpu.dimension_semantics<parallel>, #tpu.dimension_semantics<parallel>, #tpu.dimension_semantics<arbitrary>], iteration_bounds = array<i64: 1, 1, 1>, scalar_prefetch = 0 : i64, scratch_operands = 1 : i64, tpu.core_type = #tpu.core_type<tc>, window_params = [{transform_indices = @transform_0, window_bounds = array<i64: 16, 32>}, {transform_indices = @transform_1, window_bounds = array<i64: 32, 32>}, {transform_indices = @transform_2, window_bounds = array<i64: 1, 32>}, {transform_indices = @transform_3, window_bounds = array<i64: 16, 32>}]} {
    %c0_i32 = arith.constant 0 : i32
    %0 = arith.cmpi eq, %arg2, %c0_i32 : i32
    %1 = arith.extui %0 : i1 to i32
    %c0_i32_0 = arith.constant 0 : i32
    %2 = arith.cmpi ne, %1, %c0_i32_0 : i32
    scf.if %2 {
      %cst_10 = arith.constant 0.000000e+00 : f32
      %13 = vector.broadcast %cst_10 : f32 to vector<16x32xf32>
      %c0_11 = arith.constant 0 : index
      %c0_12 = arith.constant 0 : index
      %14 = vector.load %arg7[%c0_11, %c0_12] : memref<16x32xf32, #tpu.memory_space<vmem>>, vector<16x32xf32>
      tpu.vector_store %arg7[%c0_11, %c0_12], %13 {strides = array<i32>} : memref<16x32xf32, #tpu.memory_space<vmem>>, vector<16x32xf32>,
    } else {
    }
    %c0 = arith.constant 0 : index
    %c0_1 = arith.constant 0 : index
    %3 = vector.load %arg7[%c0, %c0_1] : memref<16x32xf32, #tpu.memory_space<vmem>>, vector<16x32xf32>
    %c0_2 = arith.constant 0 : index
    %c0_3 = arith.constant 0 : index
    %4 = vector.load %arg3[%c0_2, %c0_3] : memref<16x32xf32, #tpu.memory_space<vmem>>, vector<16x32xf32>
    %5 = arith.truncf %4 : vector<16x32xf32> to vector<16x32xbf16>
    %c0_4 = arith.constant 0 : index
    %c0_5 = arith.constant 0 : index
    %6 = vector.load %arg4[%c0_4, %c0_5] : memref<32x32xbf16, #tpu.memory_space<vmem>>, vector<32x32xbf16>
    %cst = arith.constant dense<0.000000e+00> : vector<16x32xf32>
    %7 = tpu.matmul %5, %6, %cst {dimension_numbers = #tpu.dot_dimension_numbers<[1], [0], [0], [1], [0, 0, 1, 1], [], []>} : vector<16x32xbf16>, vector<32x32xbf16>, vector<16x32xf32> -> vector<16x32xf32>
    %8 = arith.addf %3, %7 : vector<16x32xf32>
    %c0_6 = arith.constant 0 : index
    %c0_7 = arith.constant 0 : index
    %9 = vector.load %arg7[%c0_6, %c0_7] : memref<16x32xf32, #tpu.memory_space<vmem>>, vector<16x32xf32>
    tpu.vector_store %arg7[%c0_6, %c0_7], %8 {strides = array<i32>} : memref<16x32xf32, #tpu.memory_space<vmem>>, vector<16x32xf32>,
    %c0_i32_8 = arith.constant 0 : i32
    %10 = arith.cmpi eq, %arg2, %c0_i32_8 : i32
    %11 = arith.extui %10 : i1 to i32
    %c0_i32_9 = arith.constant 0 : i32
    %12 = arith.cmpi ne, %11, %c0_i32_9 : i32
    scf.if %12 {
      %c0_10 = arith.constant 0 : index
      %c0_11 = arith.constant 0 : index
      %13 = vector.load %arg7[%c0_10, %c0_11] : memref<16x32xf32, #tpu.memory_space<vmem>>, vector<16x32xf32>
      %c0_12 = arith.constant 0 : index
      %c0_13 = arith.constant 0 : index
      %14 = vector.load %arg5[%c0_12, %c0_13] : memref<1x32xf32, #tpu.memory_space<vmem>>, vector<1x32xf32>
      %15 = vector.broadcast %14 : vector<1x32xf32> to vector<16x32xf32>
      %16 = arith.addf %13, %15 : vector<16x32xf32>
      %17 = arith.truncf %16 : vector<16x32xf32> to vector<16x32xbf16>
      %c0_14 = arith.constant 0 : index
      %c0_15 = arith.constant 0 : index
      %18 = vector.load %arg6[%c0_14, %c0_15] : memref<16x32xbf16, #tpu.memory_space<vmem>>, vector<16x32xbf16>
      tpu.vector_store %arg6[%c0_14, %c0_15], %17 {strides = array<i32>} : memref<16x32xbf16, #tpu.memory_space<vmem>>, vector<16x32xbf16>,
    } else {
    }
    return
  }
  func.func @transform_0(%arg0: i32, %arg1: i32, %arg2: i32) -> (i32, i32) {
    %c0_i32 = arith.constant 0 : i32
    return %arg0, %arg2 : i32, i32
  }
  func.func @transform_1(%arg0: i32, %arg1: i32, %arg2: i32) -> (i32, i32) {
    %c0_i32 = arith.constant 0 : i32
    return %arg2, %arg1 : i32, i32
  }
  func.func @transform_2(%arg0: i32, %arg1: i32, %arg2: i32) -> (i32, i32) {
    %c0_i32 = arith.constant 0 : i32
    %c0_i32_0 = arith.constant 0 : i32
    return %c0_i32, %arg1 : i32, i32
  }
  func.func @transform_3(%arg0: i32, %arg1: i32, %arg2: i32) -> (i32, i32) {
    %c0_i32 = arith.constant 0 : i32
    return %arg0, %arg1 : i32, i32
  }
}

</mosaic_0001>

<bundles_post_ra>
// kernel: tpu_custom_call.1
= control target key start
LH: loop header
LB: loop body
LE: loop exit
PB: predicated region body
PF: predicated region fallthrough
CT: control target
= control target key end

     0   :  { %8 = vsyncpa [#allocation4], 0  ;;  %s345_s0 = inlined_call_operand.hbm [shape: f32[16,32], index: 0, kind: input, shape index: {}]   ;;  %s346_s1 = inlined_call_operand.hbm [shape: bf16[32,32], index: 1, kind: input, shape index: {}]   ;;  %s347_s2 = inlined_call_operand.vmem [shape: f32[1,32], index: 2, kind: input, shape index: {}]   ;;  %s348_s3 = inlined_call_operand.hbm [shape: bf16[16,32], index: 3, kind: output, shape index: {}]  }
   0x1   :  { %9 = vsyncpa [#allocation7], 0 }
   0x2   :  { %10 = vsyncpa [#allocation5], 0  ;;  %s266_s12 = smov [#allocation3]   ;;  %s194_s16 = scalar_lea.hbm %s345_s0, 256 }
   0x3   :  { %s16_s13 = sshll.u32 %s266_s12, 4  ;;  %p195_p0 = scmp.ne.s32.totalorder %s345_s0, %s194_s16  ;;  %s17_s13 = int_to_ptr.vmem [resolvable:$true] %s16_s13 }
   0x4   :  { %p198_p1 = scmp.lt.u32.totalorder %s194_s16, %s345_s0 }
   0x6   :  { %p200_p2 = pnand %p198_p1, %p195_p0 }
   0x8   :  { %203 = shalt.err (!%p200_p2)
}
   0x9   :  { %s204_s21 = scalar_lea.vmem %s17_s13, 256  ;;  %p209_p4 = scmp.lt.s32.totalorder %s17_s13, %s17_s13 }
   0xa   :  { %p205_p3 = scmp.ne.s32.totalorder %s17_s13, %s204_s21  ;;  %p210_p5 = scmp.lt.s32.totalorder %s204_s21, %s204_s21 }
   0xc   :  { %p211_p6 = por %p210_p5, %p209_p4 }
   0xe   :  { %p212_p7 = pnand %p211_p6, %p205_p3 }
  0x10   :  { %215 = shalt.err (!%p212_p7)
}
  0x11   :  { %s267_s22 = smov 128   ;;  %s268_s23 = smov 8  }
  0x12   :  { %22 = dma.hbm_to_vmem [thread:$0]  %s345_s0, 256, %s17_s13, [#allocation4], %s267_s22, %s267_s22, %s268_s23  }
  0x13   :  { %s269_s26 = smov [#allocation6]   ;;  %s216_s30 = scalar_lea.hbm %s346_s1, 256 }
  0x14   :  { %s28_s27 = sshll.u32 %s269_s26, 4  ;;  %p217_p8 = scmp.ne.s32.totalorder %s346_s1, %s216_s30  ;;  %s29_s27 = int_to_ptr.vmem [resolvable:$true] %s28_s27 }
  0x15   :  { %p220_p9 = scmp.lt.u32.totalorder %s216_s30, %s346_s1 }
  0x17   :  { %p222_p10 = pnand %p220_p9, %p217_p8 }
  0x19   :  { %225 = shalt.err (!%p222_p10)
}
  0x1a   :  { %s226_s8 = scalar_lea.vmem %s29_s27, 256  ;;  %p231_p12 = scmp.lt.s32.totalorder %s29_s27, %s29_s27 }
  0x1b   :  { %p227_p11 = scmp.ne.s32.totalorder %s29_s27, %s226_s8  ;;  %p232_p13 = scmp.lt.s32.totalorder %s226_s8, %s226_s8 }
  0x1d   :  { %p233_p0 = por %p232_p13, %p231_p12 }
  0x1f   :  { %p234_p1 = pnand %p233_p0, %p227_p11 }
  0x21   :  { %237 = shalt.err (!%p234_p1)
}
  0x22   :  { %s270_s0 = smov 64   ;;  %s271_s9 = smov 4  }
  0x23   :  { %34 = dma.hbm_to_vmem [thread:$0]  %s346_s1, 256, %s29_s27, [#allocation7], %s270_s0, %s270_s0, %s271_s9  }
  0x24   :  { %260 = dma.done.wait [#allocation4], 256  }
  0x25   :  { %261 = vsyncadd [#allocation4], 4294967040 }
  0x26   :  { %262 = dma.done.wait [#allocation7], 256  }
  0x27   :  { %263 = vsyncadd [#allocation7], 4294967040  ;;  %vm48_vm0 = vcmask 261120   ;;  %v272_v0 = vmov 0.0   ;;  %vm273_vm1 = vmmov 0   ;;  %v192_v1 = vld [vmem:[#allocation6] sm:$0xff]  }
  0x28   :  { %175 = vmatprep.subr.bf16.mxu0 %v272_v0  ;;  %179 = vmatprep.mubr.msk.bf16.mxu0 %vm273_vm1, %v272_v0  ;;  %49 = vst.msk [vmem:[#allocation2] sm:$0xff] %vm48_vm0, %v272_v0  ;;  %50 = vst.msk [vmem:[#allocation2 + $0x8] sm:$0xff] %vm48_vm0, %v272_v0  ;;  %v193_v2 = vld [vmem:[#allocation6 + $0x8] sm:$0xff]   ;;  %v53_v3 = vld [vmem:[#allocation3] sm:$0xff]  ;;  %vm143_vm2 = vcmask 257024   ;;  %s274_s13 = smov [#allocation8]  }
  0x29   :  { %176 = vmatpush3.bf16.msra.mxu0 %v192_v1  ;;  %v54_v4 = vld [vmem:[#allocation3 + $0x8] sm:$0xff]  ;;  %v167_v14 = vld [vmem:[%s347_s2] ss:$0 sm:$0xff]  ;;  %s151_s14 = sshll.u32 %s274_s13, 4  ;;  %s152_s14 = int_to_ptr.vmem [resolvable:$true] %s151_s14 }
  0x2a   :  { %177 = vmatprep.subr.bf16.mxu0 %v272_v0  ;;  %v55_v5 = vpack.c.bf16 %v54_v4, %v53_v3  ;;  %s238_s15 = scalar_lea.vmem %s152_s14, 128  ;;  %p243_p3 = scmp.lt.s32.totalorder %s152_s14, %s152_s14 }
  0x2b   :  { %p239_p2 = scmp.ne.s32.totalorder %s152_s14, %s238_s15  ;;  %p244_p4 = scmp.lt.s32.totalorder %s238_s15, %s238_s15 }
  0x2d   :  { %178 = vmatpush3.bf16.msra.mxu0 %v193_v2  ;;  %p245_p5 = por %p244_p4, %p243_p3 }
  0x2f   :  { %v51_v6 = vld [vmem:[#allocation2] sm:$0xff]  ;;  %v52_v8 = vld [vmem:[#allocation2 + $0x8] sm:$0xff]  ;;  %p246_p6 = pnand %p245_p5, %p239_p2 }
  0x30   :  { %180 = vmatmul.mubr.msk.bf16.vlgmr.msra.gmra.mrb[0].mxu0 %vm48_vm0, %v55_v5 }
 0x103   :  { %v110_v7 = vpop.f32.mrb[0].mxu0 }
 0x104   :  { %v117_v9 = vadd.f32 %v110_v7, %v51_v6  ;;  %v181_v10 = vpop.f32.mrb[1].mxu0 }
 0x105   :  { %v113_v11 = vpop.f32.mrb[2].mxu0 }
 0x106   :  { %119 = vst.msk [vmem:[#allocation2] sm:$0xff] %vm48_vm0, %v117_v9  ;;  %v118_v12 = vadd.f32 %v113_v11, %v52_v8  ;;  %v182_v13 = vpop.f32.mrb[3].mxu0 }
 0x108   :  { %120 = vst.msk [vmem:[#allocation2 + $0x8] sm:$0xff] %vm48_vm0, %v118_v12 }
 0x10d   :  { %v124_v15 = vld [vmem:[#allocation2] sm:$0xff] }
 0x10e   :  { %v133_v16 = vadd.f32 %v167_v14, %v124_v15 }
 0x10f   :  { %v125_v17 = vld [vmem:[#allocation2 + $0x8] sm:$0xff] }
 0x110   :  { %v134_v18 = vadd.f32 %v167_v14, %v125_v17  ;;  %v170_v19 = vpack.c.bf16 %v133_v16, %v133_v16 }
 0x112   :  { %v171_v20 = vpack.c.bf16 %v134_v18, %v134_v18  ;;  %144 = vst.msk [vmem:[#allocation8] sm:$0xf] %vm143_vm2, %v170_v19 }
 0x114   :  { %145 = vst.msk [vmem:[#allocation8 + $0x4] sm:$0xf] %vm143_vm2, %v171_v20 }
 0x115   :  { %249 = shalt.err (!%p246_p6)
}
 0x116   :  { %s250_s17 = scalar_lea.hbm %s348_s3, 128 }
 0x117   :  { %p251_p7 = scmp.ne.s32.totalorder %s348_s3, %s250_s17  ;;  %p254_p8 = scmp.lt.u32.totalorder %s250_s17, %s348_s3 }
 0x119   :  { %p256_p9 = pnand %p254_p8, %p251_p7 }
 0x11b   :  { %259 = shalt.err (!%p256_p9)
}
 0x11c   :  { %157 = dma.vmem_to_hbm [thread:$0]  %s152_s14, 128, %s348_s3, [#allocation5], %s270_s0, %s270_s0, %s271_s9  }
 0x11d   :  { %264 = dma.done.wait [#allocation5], 128  }
 0x11e   :  { %265 = vsyncadd [#allocation5], 4294967168 }
 0x11f   :  { %161 = vsyncpa [#allocation4], 1 }
 0x120   :  { %162 = vsyncpa [#allocation7], 1 }
 0x121   :  { %163 = vsyncpa [#allocation5], 1 }

</bundles_post_ra>
